<compile_context>
chip_gen: v6e
topology: v6e:2x2x1
jax: 0.10.0
libtpu: 0.0.40
codegen_flags: <defaults>
</compile_context>

<pallas_src>
import jax
import jax.numpy as jnp
import numpy as np
from jax import lax
from jax.experimental import pallas as pl
from jax.experimental.pallas import tpu as pltpu


# ---------------------------------------------------------------------------
# Small helpers
# ---------------------------------------------------------------------------
def _round_up(x, m):
    return ((x + m - 1) // m) * m


def _pick_tile(full, want, align):
    """Largest multiple of `align` <= want that divides `full`; else full."""
    if full <= want:
        return full
    t = (want // align) * align
    while t >= align:
        if full % t == 0:
            return t
        t -= align
    return full


def _pad_rows(a, n_pad):
    n = a.shape[0]
    if n == n_pad:
        return a
    return jnp.pad(a, ((0, n_pad - n),) + ((0, 0),) * (a.ndim - 1))


# Contract the last dim of lhs with the last dim of rhs (x @ W^T for 2-D W),
# i.e. consume nn.Linear's native (out_features, in_features) layout without
# any host-side transpose.
_DN_LAST_LAST = (((1,), (1,)), ((), ()))


# ---------------------------------------------------------------------------
# Kernel 1: Depth-2 router gate  g = relu(x @ W1^T + b1) @ W2^T + b2
#   (E padded up to 128 lanes so the output store is lane-dense.)
# ---------------------------------------------------------------------------
def _gate_kernel(x_ref, w1_ref, b1_ref, w2_ref, b2_ref, g_ref):
    x = x_ref[...]                                                     # (tm, H)
    h = lax.dot_general(x, w1_ref[...], _DN_LAST_LAST,
                        preferred_element_type=jnp.float32)
    h = jnp.maximum(h + b1_ref[...], 0.0)
    h = h.astype(x.dtype)                                              # bf16 MXU path
    g = lax.dot_general(h, w2_ref[...], _DN_LAST_LAST,
                        preferred_element_type=jnp.float32)
    g_ref[...] = g + b2_ref[...]                                       # (tm, E_pad)


def gate_forward(x_rows, w1, b1, w2, b2, *, tm=256, compute_dtype=None):
    N, H = x_rows.shape
    E = w2.shape[0]
    dtype = compute_dtype if compute_dtype is not None else x_rows.dtype

    # TODO(synk): pad H to a multiple of 128 for hidden sizes that are neither
    # lane-aligned nor small enough to be a single full-dim block.
    E_pad = _round_up(E, 128)                      # lane-dense gate output
    tm_eff = min(tm, _round_up(N, 8))
    n_pad = _round_up(N, tm_eff)

    x_p = _pad_rows(x_rows, n_pad).astype(dtype)
    w1c = jnp.asarray(w1).astype(dtype)                                # (H, H)
    b1r = jnp.asarray(b1, jnp.float32).reshape(1, H)
    w2p = jnp.pad(jnp.asarray(w2).astype(dtype), ((0, E_pad - E), (0, 0)))
    b2p = jnp.pad(jnp.asarray(b2, jnp.float32).reshape(1, E), ((0, 0), (0, E_pad - E)))

    g = pl.pallas_call(
        _gate_kernel,
        out_shape=jax.ShapeDtypeStruct((n_pad, E_pad), jnp.float32),
        grid_spec=pltpu.PrefetchScalarGridSpec(
            num_scalar_prefetch=0,
            grid=(n_pad // tm_eff,),
            in_specs=[
                pl.BlockSpec((tm_eff, H), lambda i: (i, 0)),
                pl.BlockSpec((H, H), lambda i: (0, 0)),
                pl.BlockSpec((1, H), lambda i: (0, 0)),
                pl.BlockSpec((E_pad, H), lambda i: (0, 0)),
                pl.BlockSpec((1, E_pad), lambda i: (0, 0)),
            ],
            out_specs=pl.BlockSpec((tm_eff, E_pad), lambda i: (i, 0)),
        ),
        compiler_params=pltpu.CompilerParams(
            dimension_semantics=("parallel",),
            vmem_limit_bytes=64 * 1024 * 1024,
        ),
    )(x_p, w1c, b1r, w2p, b2p)
    return g[:N, :E]                                                   # (N, E) f32


# ---------------------------------------------------------------------------
# Kernel 2: weight-ensembled linear (hot path, MXU)
#   out = x @ Wb^T + sum_e gw[:, e] * (x @ dW_e^T)
# Weights stay in their native (out, in) layout; output columns tiled by tn so
# the per-step VMEM block of the (E, H, H) delta tensor stays bounded.
# ---------------------------------------------------------------------------
def _moe_kernel(x_ref, gw_ref, wb_ref, dw_ref, o_ref):
    x = x_ref[...]                                                     # (tm, H)
    y = lax.dot_general(x, wb_ref[...], _DN_LAST_LAST,
                        preferred_element_type=jnp.float32)            # (tm, tn)
    for e in range(dw_ref.shape[0]):                                   # static unroll
        ye = lax.dot_general(x, dw_ref[e], _DN_LAST_LAST,
                             preferred_element_type=jnp.float32)
        y = y + gw_ref[:, e:e + 1] * ye
    o_ref[...] = y


def moe_forward(x_rows, gw_rows, w_base, delta_w, *, tm=256, tn=512,
                compute_dtype=None):
    N, H = x_rows.shape
    E = delta_w.shape[0]
    dtype = compute_dtype if compute_dtype is not None else x_rows.dtype

    tm_eff = min(tm, _round_up(N, 8))
    n_pad = _round_up(N, tm_eff)
    tn_eff = _pick_tile(H, tn, 128)                # output-column tile

    x_p = _pad_rows(x_rows, n_pad).astype(dtype)
    gw_p = _pad_rows(gw_rows, n_pad).astype(jnp.float32)               # (n_pad, E)
    wbc = jnp.asarray(w_base).astype(dtype)                            # (H, H)
    dwc = jnp.asarray(delta_w).astype(dtype)                           # (E, H, H)

    out = pl.pallas_call(
        _moe_kernel,
        out_shape=jax.ShapeDtypeStruct((n_pad, H), jnp.float32),
        grid_spec=pltpu.PrefetchScalarGridSpec(
            num_scalar_prefetch=0,
            grid=(n_pad // tm_eff, H // tn_eff),
            in_specs=[
                pl.BlockSpec((tm_eff, H), lambda i, j: (i, 0)),
                pl.BlockSpec((tm_eff, E), lambda i, j: (i, 0)),
                pl.BlockSpec((tn_eff, H), lambda i, j: (j, 0)),
                pl.BlockSpec((E, tn_eff, H), lambda i, j: (0, j, 0)),
            ],
            out_specs=pl.BlockSpec((tm_eff, tn_eff), lambda i, j: (i, j)),
        ),
        compiler_params=pltpu.CompilerParams(
            dimension_semantics=("parallel", "parallel"),
            vmem_limit_bytes=64 * 1024 * 1024,
        ),
    )(x_p, gw_p, wbc, dwc)
    return out[:N]                                                     # (N, H) f32


# ---------------------------------------------------------------------------
# Full WeightEnsemblingMoE forward (glue in plain JAX)
# ---------------------------------------------------------------------------
def we_moe_forward(x, params, compute_dtype=jnp.bfloat16):
    """x: (S, B, H) seq-first (batch_first=False, batch_reduce=False)."""
    S, B, H = x.shape
    E = params["delta_w"].shape[0]
    x_rows = x.reshape(S * B, H)

    # Router gate (Depth_2_Gate) + mean over the seq dim (dim 0).
    g = gate_forward(x_rows, params["gate_w1"], params["gate_b1"],
                     params["gate_w2"], params["gate_b2"],
                     compute_dtype=compute_dtype)                      # (N, E) f32
    gate_weights = g.reshape(S, B, E).mean(axis=0)                     # (B, E)

    # Routed bias handled outside the hot kernel (O(B*E*H) work).
    b_routed = params["b_base"][None] + gate_weights @ params["delta_b"]  # (B, H)

    # Per-row routing weights (each row (s, b) uses its sample's gate weights).
    gw_rows = jnp.broadcast_to(gate_weights[None], (S, B, E)).reshape(S * B, E)

    out_rows = moe_forward(x_rows, gw_rows, params["w_base"],
                           params["delta_w"], compute_dtype=compute_dtype)
    return out_rows.reshape(S, B, H) + b_routed[None]                  # f32


# ---------------------------------------------------------------------------
# Pure-JAX reference (literal per-sample merged state-dict semantics, f32)
# ---------------------------------------------------------------------------
def we_moe_reference(x, params):
    h = jnp.maximum(
        jnp.einsum("sbh,kh->sbk", x, params["gate_w1"]) + params["gate_b1"], 0.0)
    g = jnp.einsum("sbk,ek->sbe", h, params["gate_w2"]) + params["gate_b2"]
    gw = g.mean(axis=0)                                                # (B, E)
    W = params["w_base"][None] + jnp.einsum("be,eoh->boh", gw, params["delta_w"])
    bvec = params["b_base"][None] + gw @ params["delta_b"]             # (B, H)
    return jnp.einsum("sbh,boh->sbo", x, W) + bvec[None]


# ---------------------------------------------------------------------------
# Deterministic parameter construction (mirrors the module's __init__ shapes)
# ---------------------------------------------------------------------------
def make_params(key, hidden_size, num_experts, init_lambda=0.2):
    H, E = hidden_size, num_experts
    ks = jax.random.split(key, 6)
    # Depth_2_Gate init: fc1 ~ N(0, 0.01), b1 = 0; fc2 ~ N(0, 0.01), b2 = lambda
    gate_w1 = 0.01 * jax.random.normal(ks[0], (H, H), jnp.float32)
    gate_b1 = jnp.zeros((H,), jnp.float32)
    gate_w2 = 0.01 * jax.random.normal(ks[1], (E, H), jnp.float32)
    gate_b2 = jnp.full((E,), init_lambda, jnp.float32)
    # base linear + expert linears; task vectors = expert - base (as in __init__)
    w_base = 0.1 * jax.random.normal(ks[2], (H, H), jnp.float32)
    b_base = 0.1 * jax.random.normal(ks[3], (H,), jnp.float32)
    w_experts = 0.1 * jax.random.normal(ks[4], (E, H, H), jnp.float32)
    b_experts = 0.1 * jax.random.normal(ks[5], (E, H), jnp.float32)
    return dict(
        gate_w1=gate_w1, gate_b1=gate_b1, gate_w2=gate_w2, gate_b2=gate_b2,
        w_base=w_base, b_base=b_base,
        delta_w=w_experts - w_base[None],
        delta_b=b_experts - b_base[None],
    )


if __name__ == "__main__":
    S, B, H, E = 8, 2, 32, 4          # seq, batch, hidden, num_experts
    key = jax.random.PRNGKey(0)
    kx, kp = jax.random.split(key)
    x = jax.random.normal(kx, (S, B, H), jnp.float32)   # seq-first (batch_first=False)
    params = make_params(kp, H, E)

    ref = we_moe_reference(x, params)

    # f32 compute path: tight check of the semantics.
    out_f32 = jax.block_until_ready(we_moe_forward(x, params, compute_dtype=jnp.float32))
    np.testing.assert_allclose(np.asarray(out_f32), np.asarray(ref),
                               rtol=1e-4, atol=1e-4)

    # bf16 compute path (the intended fast path): looser tolerance.
    out_bf16 = jax.block_until_ready(we_moe_forward(x, params, compute_dtype=jnp.bfloat16))
    np.testing.assert_allclose(np.asarray(out_bf16), np.asarray(ref),
                               rtol=3e-2, atol=3e-2)

    assert out_bf16.shape == (S, B, H)
    print("KERNEL_OK")
</pallas_src>

<mosaic_0001>
module attributes {stable_mosaic.version = 11 : i64} {
  func.func @_gate_kernel(%arg0: i32, %arg1: memref<16x32xf32, #tpu.memory_space<vmem>>, %arg2: memref<32x32xf32, #tpu.memory_space<vmem>>, %arg3: memref<1x32xf32, #tpu.memory_space<vmem>>, %arg4: memref<128x32xf32, #tpu.memory_space<vmem>>, %arg5: memref<1x128xf32, #tpu.memory_space<vmem>>, %arg6: memref<16x128xf32, #tpu.memory_space<vmem>>) attributes {dimension_semantics = [#tpu.dimension_semantics<parallel>], iteration_bounds = array<i64: 1>, scalar_prefetch = 0 : i64, scratch_operands = 0 : i64, tpu.core_type = #tpu.core_type<tc>, window_params = [{transform_indices = @transform_0, window_bounds = array<i64: 16, 32>}, {pipeline_mode = #tpu.pipeline_mode<synchronous>, transform_indices = @transform_1, window_bounds = array<i64: 32, 32>}, {pipeline_mode = #tpu.pipeline_mode<synchronous>, transform_indices = @transform_2, window_bounds = array<i64: 1, 32>}, {pipeline_mode = #tpu.pipeline_mode<synchronous>, transform_indices = @transform_3, window_bounds = array<i64: 128, 32>}, {pipeline_mode = #tpu.pipeline_mode<synchronous>, transform_indices = @transform_4, window_bounds = array<i64: 1, 128>}, {transform_indices = @transform_5, window_bounds = array<i64: 16, 128>}]} {
    %c0 = arith.constant 0 : index
    %c0_0 = arith.constant 0 : index
    %0 = vector.load %arg1[%c0, %c0_0] : memref<16x32xf32, #tpu.memory_space<vmem>>, vector<16x32xf32>
    %c0_1 = arith.constant 0 : index
    %c0_2 = arith.constant 0 : index
    %1 = vector.load %arg2[%c0_1, %c0_2] : memref<32x32xf32, #tpu.memory_space<vmem>>, vector<32x32xf32>
    %cst = arith.constant dense<0.000000e+00> : vector<16x32xf32>
    %2 = tpu.matmul %0, %1, %cst {dimension_numbers = #tpu.dot_dimension_numbers<[1], [1], [0], [0], [0, 0, 1, 0], [], []>} : vector<16x32xf32>, vector<32x32xf32>, vector<16x32xf32> -> vector<16x32xf32>
    %c0_3 = arith.constant 0 : index
    %c0_4 = arith.constant 0 : index
    %3 = vector.load %arg3[%c0_3, %c0_4] : memref<1x32xf32, #tpu.memory_space<vmem>>, vector<1x32xf32>
    %4 = vector.broadcast %3 : vector<1x32xf32> to vector<16x32xf32>
    %5 = arith.addf %2, %4 : vector<16x32xf32>
    %cst_5 = arith.constant 0.000000e+00 : f32
    %6 = vector.broadcast %cst_5 : f32 to vector<16x32xf32>
    %7 = arith.maximumf %5, %6 : vector<16x32xf32>
    %c0_6 = arith.constant 0 : index
    %c0_7 = arith.constant 0 : index
    %8 = vector.load %arg4[%c0_6, %c0_7] : memref<128x32xf32, #tpu.memory_space<vmem>>, vector<128x32xf32>
    %cst_8 = arith.constant dense<0.000000e+00> : vector<16x128xf32>
    %9 = tpu.matmul %7, %8, %cst_8 {dimension_numbers = #tpu.dot_dimension_numbers<[1], [1], [0], [0], [0, 0, 1, 0], [], []>} : vector<16x32xf32>, vector<128x32xf32>, vector<16x128xf32> -> vector<16x128xf32>
    %c0_9 = arith.constant 0 : index
    %c0_10 = arith.constant 0 : index
    %10 = vector.load %arg5[%c0_9, %c0_10] : memref<1x128xf32, #tpu.memory_space<vmem>>, vector<1x128xf32>
    %11 = vector.broadcast %10 : vector<1x128xf32> to vector<16x128xf32>
    %12 = arith.addf %9, %11 : vector<16x128xf32>
    %c0_11 = arith.constant 0 : index
    %c0_12 = arith.constant 0 : index
    %13 = vector.load %arg6[%c0_11, %c0_12] : memref<16x128xf32, #tpu.memory_space<vmem>>, vector<16x128xf32>
    tpu.vector_store %arg6[%c0_11, %c0_12], %12 {strides = array<i32>} : memref<16x128xf32, #tpu.memory_space<vmem>>, vector<16x128xf32>,
    return
  }
  func.func @transform_0(%arg0: i32) -> (i32, i32) {
    %c0_i32 = arith.constant 0 : i32
    %c0_i32_0 = arith.constant 0 : i32
    return %arg0, %c0_i32 : i32, i32
  }
  func.func @transform_1(%arg0: i32) -> (i32, i32) {
    %c0_i32 = arith.constant 0 : i32
    %c0_i32_0 = arith.constant 0 : i32
    %c0_i32_1 = arith.constant 0 : i32
    return %c0_i32, %c0_i32_0 : i32, i32
  }
  func.func @transform_2(%arg0: i32) -> (i32, i32) {
    %c0_i32 = arith.constant 0 : i32
    %c0_i32_0 = arith.constant 0 : i32
    %c0_i32_1 = arith.constant 0 : i32
    return %c0_i32, %c0_i32_0 : i32, i32
  }
  func.func @transform_3(%arg0: i32) -> (i32, i32) {
    %c0_i32 = arith.constant 0 : i32
    %c0_i32_0 = arith.constant 0 : i32
    %c0_i32_1 = arith.constant 0 : i32
    return %c0_i32, %c0_i32_0 : i32, i32
  }
  func.func @transform_4(%arg0: i32) -> (i32, i32) {
    %c0_i32 = arith.constant 0 : i32
    %c0_i32_0 = arith.constant 0 : i32
    %c0_i32_1 = arith.constant 0 : i32
    return %c0_i32, %c0_i32_0 : i32, i32
  }
  func.func @transform_5(%arg0: i32) -> (i32, i32) {
    %c0_i32 = arith.constant 0 : i32
    %c0_i32_0 = arith.constant 0 : i32
    return %arg0, %c0_i32 : i32, i32
  }
}

</mosaic_0001>

<bundles_post_ra>
// kernel: tpu_custom_call.1
= control target key start
LH: loop header
LB: loop body
LE: loop exit
PB: predicated region body
PF: predicated region fallthrough
CT: control target
= control target key end

     0   :  { %vm34_vm0 = vcmask 261120   ;;  %s573_s0 = inlined_call_operand.vmem [shape: f32[16,32], index: 0, kind: input, shape index: {}]   ;;  %s574_s1 = inlined_call_operand.vmem [shape: f32[32,32], index: 1, kind: input, shape index: {}]   ;;  %s575_s2 = inlined_call_operand.vmem [shape: f32[1,32], index: 2, kind: input, shape index: {}]   ;;  %s576_s3 = inlined_call_operand.vmem [shape: f32[128,32], index: 3, kind: input, shape index: {}]   ;;  %s577_s4 = inlined_call_operand.vmem [shape: f32[1,128], index: 4, kind: input, shape index: {}]   ;;  %s578_s5 = inlined_call_operand.hbm [shape: f32[16,128], index: 5, kind: output, shape index: {}]  }
   0x1   :  { %v26_v0 = vld [vmem:[%s574_s1 + $0x18] sm:$0xff]  ;;  %v25_v1 = vld [vmem:[%s574_s1 + $0x10] sm:$0xff]  ;;  %v21_v2 = vld [vmem:[%s573_s0] sm:$0xff] }
   0x2   :  { %350 = vmatprep.subr.msk.mxu0 %vm34_vm0, %v26_v0  ;;  %358 = vmatprep.mubr.msk.f32.mxu0 %vm34_vm0, %v21_v2  ;;  %v145_v3 = vld [vmem:[%s576_s3 + $0x78] sm:$0xff]  ;;  %v144_v4 = vld [vmem:[%s576_s3 + $0x70] sm:$0xff]  ;;  %v24_v5 = vld [vmem:[%s574_s1 + $0x8] sm:$0xff] }
   0x3   :  { %351 = vmatpush3.xpose.msk.msra.mxu0 %vm34_vm0, %v26_v0  ;;  %361 = vmatprep.subr.msk.mxu1 %vm34_vm0, %v145_v3  ;;  %v143_v6 = vld [vmem:[%s576_s3 + $0x68] sm:$0xff] }
   0x4   :  { %352 = vmatprep.subr.msk.mxu0 %vm34_vm0, %v25_v1  ;;  %362 = vmatpush3.xpose.msk.msra.mxu1 %vm34_vm0, %v145_v3 }
   0x5   :  { %363 = vmatprep.subr.msk.mxu1 %vm34_vm0, %v144_v4 }
   0x7   :  { %353 = vmatpush3.xpose.msk.msra.mxu0 %vm34_vm0, %v25_v1 }
   0x8   :  { %10 = vsyncpa [#allocation3], 0  ;;  %354 = vmatprep.subr.msk.mxu0 %vm34_vm0, %v24_v5  ;;  %v23_v7 = vld [vmem:[%s574_s1] sm:$0xff]  ;;  %364 = vmatpush3.xpose.msk.msra.mxu1 %vm34_vm0, %v144_v4  ;;  %v22_v9 = vld [vmem:[%s573_s0 + $0x8] sm:$0xff]  ;;  %s421_s12 = smov [#allocation2]  }
   0x9   :  { %365 = vmatprep.subr.msk.mxu1 %vm34_vm0, %v143_v6  ;;  %v142_v8 = vld [vmem:[%s576_s3 + $0x60] sm:$0xff]  ;;  %v141_v10 = vld [vmem:[%s576_s3 + $0x58] sm:$0xff]  ;;  %v140_v11 = vld [vmem:[%s576_s3 + $0x50] sm:$0xff]  ;;  %s289_s13 = sshll.u32 %s421_s12, 4  ;;  %s290_s13 = int_to_ptr.vmem [resolvable:$true] %s289_s13 }
   0xa   :  { %v139_v12 = vld [vmem:[%s576_s3 + $0x48] sm:$0xff]  ;;  %v138_v13 = vld [vmem:[%s576_s3 + $0x40] sm:$0xff]  ;;  %v137_v14 = vld [vmem:[%s576_s3 + $0x38] sm:$0xff]  ;;  %p404_p1 = scmp.lt.s32.totalorder %s290_s13, %s290_s13 }
   0xb   :  { %355 = vmatpush3.xpose.msk.msra.mxu0 %vm34_vm0, %v24_v5  ;;  %v136_v15 = vld [vmem:[%s576_s3 + $0x30] sm:$0xff]  ;;  %v135_v16 = vld [vmem:[%s576_s3 + $0x28] sm:$0xff]  ;;  %v134_v17 = vld [vmem:[%s576_s3 + $0x20] sm:$0xff] }
   0xc   :  { %356 = vmatprep.subr.msk.mxu0 %vm34_vm0, %v23_v7  ;;  %366 = vmatpush3.xpose.msk.msra.mxu1 %vm34_vm0, %v143_v6  ;;  %v133_v18 = vld [vmem:[%s576_s3 + $0x18] sm:$0xff]  ;;  %v132_v19 = vld [vmem:[%s576_s3 + $0x10] sm:$0xff]  ;;  %v131_v20 = vld [vmem:[%s576_s3 + $0x8] sm:$0xff] }
   0xd   :  { %367 = vmatprep.subr.msk.mxu1 %vm34_vm0, %v142_v8  ;;  %v130_v21 = vld [vmem:[%s576_s3] sm:$0xff] }
   0xe   :  { %v300_v22 = vld [vmem:[%s575_s2] ss:$0 sm:$0xff]  ;;  %s399_s2 = scalar_lea.vmem %s290_s13, 256 }
   0xf   :  { %357 = vmatpush3.xpose.msk.msra.mxu0 %vm34_vm0, %v23_v7  ;;  %v307_v29 = vld [vmem:[%s577_s4] ss:$0 sm:$0xff]  ;;  %p400_p0 = scmp.ne.s32.totalorder %s290_s13, %s399_s2  ;;  %p405_p2 = scmp.lt.s32.totalorder %s399_s2, %s399_s2 }
  0x10   :  { %368 = vmatpush3.xpose.msk.msra.mxu1 %vm34_vm0, %v142_v8 }
  0x11   :  { %369 = vmatprep.subr.msk.mxu1 %vm34_vm0, %v141_v10  ;;  %p406_p3 = por %p405_p2, %p404_p1 }
  0x12   :  { %359 = vmatmul.mubr.msk.f32.vlgmr.msra.gmra.mxu0 %vm34_vm0, %v22_v9 }
  0x13   :  { %p407_p4 = pnand %p406_p3, %p400_p0 }
  0x14   :  { %370 = vmatpush3.xpose.msk.msra.mxu1 %vm34_vm0, %v141_v10 }
  0x15   :  { %371 = vmatprep.subr.msk.mxu1 %vm34_vm0, %v140_v11 }
  0x18   :  { %372 = vmatpush3.xpose.msk.msra.mxu1 %vm34_vm0, %v140_v11 }
  0x19   :  { %373 = vmatprep.subr.msk.mxu1 %vm34_vm0, %v139_v12 }
  0x1c   :  { %374 = vmatpush3.xpose.msk.msra.mxu1 %vm34_vm0, %v139_v12 }
  0x1d   :  { %375 = vmatprep.subr.msk.mxu1 %vm34_vm0, %v138_v13 }
  0x20   :  { %376 = vmatpush3.xpose.msk.msra.mxu1 %vm34_vm0, %v138_v13 }
  0x21   :  { %377 = vmatprep.subr.msk.mxu1 %vm34_vm0, %v137_v14 }
  0x24   :  { %378 = vmatpush3.xpose.msk.msra.mxu1 %vm34_vm0, %v137_v14 }
  0x25   :  { %379 = vmatprep.subr.msk.mxu1 %vm34_vm0, %v136_v15 }
  0x28   :  { %380 = vmatpush3.xpose.msk.msra.mxu1 %vm34_vm0, %v136_v15 }
  0x29   :  { %381 = vmatprep.subr.msk.mxu1 %vm34_vm0, %v135_v16 }
  0x2c   :  { %382 = vmatpush3.xpose.msk.msra.mxu1 %vm34_vm0, %v135_v16 }
  0x2d   :  { %383 = vmatprep.subr.msk.mxu1 %vm34_vm0, %v134_v17 }
  0x30   :  { %384 = vmatpush3.xpose.msk.msra.mxu1 %vm34_vm0, %v134_v17 }
  0x31   :  { %385 = vmatprep.subr.msk.mxu1 %vm34_vm0, %v133_v18 }
  0x34   :  { %386 = vmatpush3.xpose.msk.msra.mxu1 %vm34_vm0, %v133_v18 }
  0x35   :  { %387 = vmatprep.subr.msk.mxu1 %vm34_vm0, %v132_v19 }
  0x38   :  { %388 = vmatpush3.xpose.msk.msra.mxu1 %vm34_vm0, %v132_v19 }
  0x39   :  { %389 = vmatprep.subr.msk.mxu1 %vm34_vm0, %v131_v20 }
  0x3c   :  { %390 = vmatpush3.xpose.msk.msra.mxu1 %vm34_vm0, %v131_v20 }
  0x3d   :  { %391 = vmatprep.subr.msk.mxu1 %vm34_vm0, %v130_v21 }
  0x40   :  { %392 = vmatpush3.xpose.msk.msra.mxu1 %vm34_vm0, %v130_v21 }
  0xd2   :  { %v360_v23 = vpop.f32.mrf.mxu0 }
  0xd3   :  { %v125_v24 = vadd.f32 %v360_v23, %v300_v22 }
  0xd4   :  { %v119_v25 = vpop.f32.mrf.mxu0 }
  0xd5   :  { %v120_v26 = vadd.f32 %v300_v22, %v119_v25  ;;  %v129_v28 = vmax.f32 %v125_v24, 0.0 }
  0xd7   :  { %v128_v27 = vmax.f32 %v120_v26, 0.0 }
  0xd9   :  { %393 = vmatprep.mubr.msk.f32.mxu1 %vm34_vm0, %v128_v27 }
  0xda   :  { %394 = vmatmul.mubr.msk.f32.vlgmr.msra.gmra.mxu1 %vm34_vm0, %v129_v28 }
 0x19a   :  { %v395_v30 = vpop.f32.mrf.mxu1 }
 0x19b   :  { %v279_v31 = vadd.f32 %v395_v30, %v307_v29 }
 0x19c   :  { %v273_v32 = vpop.f32.mrf.mxu1 }
 0x19d   :  { %283 = vst [vmem:[#allocation2 + $0x8] sm:$0xff] %v279_v31  ;;  %v274_v33 = vadd.f32 %v307_v29, %v273_v32 }
 0x19f   :  { %282 = vst [vmem:[#allocation2] sm:$0xff] %v274_v33 }
 0x1a0   :  { %410 = shalt.err (!%p407_p4)
}
 0x1a1   :  { %s422_s14 = smov 128   ;;  %s423_s15 = smov 8  }
 0x1a2   :  { %295 = dma.vmem_to_hbm [thread:$0]  %s290_s13, 256, %s578_s5, [#allocation3], %s422_s14, %s422_s14, %s423_s15  }
 0x1a3   :  { %419 = dma.done.wait [#allocation3], 256  }
 0x1a4   :  { %420 = vsyncadd [#allocation3], 4294967040 }
 0x1a5   :  { %299 = vsyncpa [#allocation3], 1 }

</bundles_post_ra>
